<compile_context>
chip_gen: v7x
topology: tpu7x:2x2x1
jax: 0.10.0
libtpu: 0.0.40
codegen_flags: <defaults>
</compile_context>

<pallas_src>
import functools

import jax
import jax.numpy as jnp
from jax.experimental import pallas as pl
from jax.experimental.pallas import tpu as pltpu


def _round_up(n, m):
    return ((n + m - 1) // m) * m


def _discriminator_kernel(x_ref, w1_ref, b1_ref, w2_ref, b2_ref,
                          w3_ref, b3_ref, out_ref):
    # x / weights are bf16; accumulate in f32 on the MXU.
    x = x_ref[...]

    # map1 + ReLU
    h1 = jnp.dot(x, w1_ref[...], preferred_element_type=jnp.float32)
    h1 = jnp.maximum(h1 + b1_ref[...], 0.0)

    # map2 + ReLU
    h2 = jnp.dot(h1.astype(jnp.bfloat16), w2_ref[...],
                 preferred_element_type=jnp.float32)
    h2 = jnp.maximum(h2 + b2_ref[...], 0.0)

    # map3 (output lanes padded to 128; padded bias = -1e30 so exp -> 0)
    logits = jnp.dot(h2.astype(jnp.bfloat16), w3_ref[...],
                     preferred_element_type=jnp.float32)
    logits = logits + b3_ref[...]

    # softmax over the (padded) last dim
    m = jnp.max(logits, axis=-1, keepdims=True)
    e = jnp.exp(logits - m)
    denom = jnp.sum(e, axis=-1, keepdims=True)
    out_ref[...] = (e * pl.reciprocal(denom, approx=True)).astype(out_ref.dtype)


@functools.partial(jax.jit, static_argnames=("batch_tile",))
def discriminator_forward(x, params, *, batch_tile=512):
    """x: (..., n_layersDecod * hidden_size) -> softmax probs (B, output_size)."""
    w1, b1, w2, b2, w3, b3 = params
    in_dim = w1.shape[0]
    hidden = w1.shape[1]
    out_dim = w3.shape[1]

    # Equivalent of x.view(-1, n_layersDecod * hidden_size)
    x2d = x.reshape(-1, in_dim)
    B = x2d.shape[0]

    # Batch tile: multiple of 16 (bf16 sublane packing); cap at batch_tile.
    tb = batch_tile if B >= batch_tile else _round_up(max(B, 1), 16)
    b_pad = _round_up(B, tb)
    n_tiles = b_pad // tb

    # Pad batch rows (discarded after the call) and cast activations/weights
    # to bf16 ONCE here (not per grid step).
    x2d = jnp.pad(x2d, ((0, b_pad - B), (0, 0))).astype(jnp.bfloat16)
    w1_bf = w1.astype(jnp.bfloat16)
    w2_bf = w2.astype(jnp.bfloat16)

    # Lane-dense logits: pad output columns to a multiple of 128.
    pad_n = _round_up(out_dim, 128)
    w3_bf = jnp.pad(w3, ((0, 0), (0, pad_n - out_dim))).astype(jnp.bfloat16)
    b3_pad = jnp.pad(b3.reshape(1, -1).astype(jnp.float32),
                     ((0, 0), (0, pad_n - out_dim)),
                     constant_values=-1e30)

    b1_2d = b1.reshape(1, -1).astype(jnp.float32)
    b2_2d = b2.reshape(1, -1).astype(jnp.float32)

    # Weights/biases: constant index_map -> resident in VMEM across the grid.
    resident = lambda a: pl.BlockSpec(a.shape, lambda i: (0,) * a.ndim)

    probs_padded = pl.pallas_call(
        _discriminator_kernel,
        out_shape=jax.ShapeDtypeStruct((b_pad, pad_n), jnp.float32),
        grid=(n_tiles,),
        in_specs=[
            pl.BlockSpec((tb, in_dim), lambda i: (i, 0)),   # x tiles (pipelined)
            resident(w1_bf), resident(b1_2d),
            resident(w2_bf), resident(b2_2d),
            resident(w3_bf), resident(b3_pad),
        ],
        out_specs=pl.BlockSpec((tb, pad_n), lambda i: (i, 0)),
        compiler_params=pltpu.CompilerParams(
            dimension_semantics=("parallel",),   # 2 TCs on v7x; no-op on v5e/v6e
        ),
        # TODO(synk): if hidden_size grows, re-derive tb against v7x's 64 MiB
        # VMEM and set vmem_limit_bytes explicitly.
    )(x2d, w1_bf, b1_2d, w2_bf, b2_2d, w3_bf, b3_pad)

    return probs_padded[:B, :out_dim]


def init_discriminator_params(key, n_layersDecod, hidden_size, output_size=2):
    """Deterministic init mirroring nn.Linear's U(-1/sqrt(fan_in), 1/sqrt(fan_in)).
    Weights are stored as (in_features, out_features)."""
    in1 = n_layersDecod * hidden_size
    ks = jax.random.split(key, 6)

    def lin(kw, kb, fan_in, fan_out):
        bound = 1.0 / jnp.sqrt(jnp.float32(fan_in))
        w = jax.random.uniform(kw, (fan_in, fan_out), jnp.float32, -bound, bound)
        b = jax.random.uniform(kb, (fan_out,), jnp.float32, -bound, bound)
        return w, b

    w1, b1 = lin(ks[0], ks[1], in1, hidden_size)
    w2, b2 = lin(ks[2], ks[3], hidden_size, hidden_size)
    w3, b3 = lin(ks[4], ks[5], hidden_size, output_size)
    return (w1, b1, w2, b2, w3, b3)


if __name__ == "__main__":
    n_layersDecod = 2
    hidden_size = 32
    output_size = 2
    batch = 8

    key = jax.random.PRNGKey(0)
    k_params, k_x = jax.random.split(key)

    params = init_discriminator_params(k_params, n_layersDecod, hidden_size,
                                       output_size)
    # Input shaped like a decoder hidden state, batch-major; forward flattens
    # it to (batch, n_layers*hidden) via view(-1, ...).
    x = jax.random.normal(k_x, (batch, n_layersDecod, hidden_size),
                          dtype=jnp.float32)

    probs = discriminator_forward(x, params)
    probs = jax.block_until_ready(probs)

    # Reference check in plain JAX (f32); bf16 matmuls + approx reciprocal
    # need a looser tolerance than the old 1e-5.
    w1, b1, w2, b2, w3, b3 = params
    xr = x.reshape(-1, n_layersDecod * hidden_size)
    h = jnp.maximum(xr @ w1 + b1, 0.0)
    h = jnp.maximum(h @ w2 + b2, 0.0)
    ref = jax.nn.softmax(h @ w3 + b3, axis=-1)

    assert probs.shape == (batch, output_size)
    assert jnp.allclose(probs, ref, atol=3e-2, rtol=3e-2)
    assert jnp.allclose(jnp.sum(probs, axis=-1), 1.0, atol=1e-2)

    print("KERNEL_OK")
</pallas_src>

<mosaic_0001>
module attributes {stable_mosaic.version = 11 : i64} {
  func.func @_discriminator_kernel(%arg0: i32, %arg1: memref<16x64xbf16, #tpu.memory_space<vmem>>, %arg2: memref<64x32xbf16, #tpu.memory_space<vmem>>, %arg3: memref<1x32xf32, #tpu.memory_space<vmem>>, %arg4: memref<32x32xbf16, #tpu.memory_space<vmem>>, %arg5: memref<1x32xf32, #tpu.memory_space<vmem>>, %arg6: memref<32x128xbf16, #tpu.memory_space<vmem>>, %arg7: memref<1x128xf32, #tpu.memory_space<vmem>>, %arg8: memref<16x128xf32, #tpu.memory_space<vmem>>) attributes {dimension_semantics = [#tpu.dimension_semantics<parallel>], iteration_bounds = array<i64: 1>, scalar_prefetch = 0 : i64, scratch_operands = 0 : i64, tpu.core_type = #tpu.core_type<tc>, window_params = [{transform_indices = @transform_0, window_bounds = array<i64: 16, 64>}, {pipeline_mode = #tpu.pipeline_mode<synchronous>, transform_indices = @transform_1, window_bounds = array<i64: 64, 32>}, {pipeline_mode = #tpu.pipeline_mode<synchronous>, transform_indices = @transform_2, window_bounds = array<i64: 1, 32>}, {pipeline_mode = #tpu.pipeline_mode<synchronous>, transform_indices = @transform_3, window_bounds = array<i64: 32, 32>}, {pipeline_mode = #tpu.pipeline_mode<synchronous>, transform_indices = @transform_4, window_bounds = array<i64: 1, 32>}, {pipeline_mode = #tpu.pipeline_mode<synchronous>, transform_indices = @transform_5, window_bounds = array<i64: 32, 128>}, {pipeline_mode = #tpu.pipeline_mode<synchronous>, transform_indices = @transform_6, window_bounds = array<i64: 1, 128>}, {transform_indices = @transform_7, window_bounds = array<i64: 16, 128>}]} {
    %c0 = arith.constant 0 : index
    %c0_0 = arith.constant 0 : index
    %0 = vector.load %arg1[%c0, %c0_0] : memref<16x64xbf16, #tpu.memory_space<vmem>>, vector<16x64xbf16>
    %c0_1 = arith.constant 0 : index
    %c0_2 = arith.constant 0 : index
    %1 = vector.load %arg2[%c0_1, %c0_2] : memref<64x32xbf16, #tpu.memory_space<vmem>>, vector<64x32xbf16>
    %cst = arith.constant dense<0.000000e+00> : vector<16x32xf32>
    %2 = tpu.matmul %0, %1, %cst {dimension_numbers = #tpu.dot_dimension_numbers<[1], [0], [0], [1], [0, 0, 1, 1], [], []>} : vector<16x64xbf16>, vector<64x32xbf16>, vector<16x32xf32> -> vector<16x32xf32>
    %c0_3 = arith.constant 0 : index
    %c0_4 = arith.constant 0 : index
    %3 = vector.load %arg3[%c0_3, %c0_4] : memref<1x32xf32, #tpu.memory_space<vmem>>, vector<1x32xf32>
    %4 = vector.broadcast %3 : vector<1x32xf32> to vector<16x32xf32>
    %5 = arith.addf %2, %4 : vector<16x32xf32>
    %cst_5 = arith.constant 0.000000e+00 : f32
    %6 = vector.broadcast %cst_5 : f32 to vector<16x32xf32>
    %7 = arith.maximumf %5, %6 : vector<16x32xf32>
    %8 = arith.truncf %7 : vector<16x32xf32> to vector<16x32xbf16>
    %c0_6 = arith.constant 0 : index
    %c0_7 = arith.constant 0 : index
    %9 = vector.load %arg4[%c0_6, %c0_7] : memref<32x32xbf16, #tpu.memory_space<vmem>>, vector<32x32xbf16>
    %cst_8 = arith.constant dense<0.000000e+00> : vector<16x32xf32>
    %10 = tpu.matmul %8, %9, %cst_8 {dimension_numbers = #tpu.dot_dimension_numbers<[1], [0], [0], [1], [0, 0, 1, 1], [], []>} : vector<16x32xbf16>, vector<32x32xbf16>, vector<16x32xf32> -> vector<16x32xf32>
    %c0_9 = arith.constant 0 : index
    %c0_10 = arith.constant 0 : index
    %11 = vector.load %arg5[%c0_9, %c0_10] : memref<1x32xf32, #tpu.memory_space<vmem>>, vector<1x32xf32>
    %12 = vector.broadcast %11 : vector<1x32xf32> to vector<16x32xf32>
    %13 = arith.addf %10, %12 : vector<16x32xf32>
    %cst_11 = arith.constant 0.000000e+00 : f32
    %14 = vector.broadcast %cst_11 : f32 to vector<16x32xf32>
    %15 = arith.maximumf %13, %14 : vector<16x32xf32>
    %16 = arith.truncf %15 : vector<16x32xf32> to vector<16x32xbf16>
    %c0_12 = arith.constant 0 : index
    %c0_13 = arith.constant 0 : index
    %17 = vector.load %arg6[%c0_12, %c0_13] : memref<32x128xbf16, #tpu.memory_space<vmem>>, vector<32x128xbf16>
    %cst_14 = arith.constant dense<0.000000e+00> : vector<16x128xf32>
    %18 = tpu.matmul %16, %17, %cst_14 {dimension_numbers = #tpu.dot_dimension_numbers<[1], [0], [0], [1], [0, 0, 1, 1], [], []>} : vector<16x32xbf16>, vector<32x128xbf16>, vector<16x128xf32> -> vector<16x128xf32>
    %c0_15 = arith.constant 0 : index
    %c0_16 = arith.constant 0 : index
    %19 = vector.load %arg7[%c0_15, %c0_16] : memref<1x128xf32, #tpu.memory_space<vmem>>, vector<1x128xf32>
    %20 = vector.broadcast %19 : vector<1x128xf32> to vector<16x128xf32>
    %21 = arith.addf %18, %20 : vector<16x128xf32>
    %cst_17 = arith.constant dense<0xFF800000> : vector<16xf32>
    %22 = vector.multi_reduction <maximumf>, %21, %cst_17 [1] : vector<16x128xf32> to vector<16xf32>
    %23 = vector.shape_cast %22 : vector<16xf32> to vector<16x1xf32>
    %24 = vector.broadcast %23 : vector<16x1xf32> to vector<16x128xf32>
    %25 = arith.subf %21, %24 : vector<16x128xf32>
    %26 = math.exp %25 : vector<16x128xf32>
    %cst_18 = arith.constant dense<0.000000e+00> : vector<16xf32>
    %27 = vector.multi_reduction <add>, %26, %cst_18 [1] : vector<16x128xf32> to vector<16xf32>
    %28 = vector.shape_cast %27 : vector<16xf32> to vector<16x1xf32>
    %29 = tpu.reciprocal %28 {approx = true} : vector<16x1xf32> -> vector<16x1xf32>
    %30 = vector.broadcast %29 : vector<16x1xf32> to vector<16x128xf32>
    %31 = arith.mulf %26, %30 : vector<16x128xf32>
    %c0_19 = arith.constant 0 : index
    %c0_20 = arith.constant 0 : index
    %32 = vector.load %arg8[%c0_19, %c0_20] : memref<16x128xf32, #tpu.memory_space<vmem>>, vector<16x128xf32>
    tpu.vector_store %arg8[%c0_19, %c0_20], %31 {strides = array<i32>} : memref<16x128xf32, #tpu.memory_space<vmem>>, vector<16x128xf32>,
    return
  }
  func.func @transform_0(%arg0: i32) -> (i32, i32) {
    %c0_i32 = arith.constant 0 : i32
    %c0_i32_0 = arith.constant 0 : i32
    return %arg0, %c0_i32 : i32, i32
  }
  func.func @transform_1(%arg0: i32) -> (i32, i32) {
    %c0_i32 = arith.constant 0 : i32
    %c0_i32_0 = arith.constant 0 : i32
    %c0_i32_1 = arith.constant 0 : i32
    return %c0_i32, %c0_i32_0 : i32, i32
  }
  func.func @transform_2(%arg0: i32) -> (i32, i32) {
    %c0_i32 = arith.constant 0 : i32
    %c0_i32_0 = arith.constant 0 : i32
    %c0_i32_1 = arith.constant 0 : i32
    return %c0_i32, %c0_i32_0 : i32, i32
  }
  func.func @transform_3(%arg0: i32) -> (i32, i32) {
    %c0_i32 = arith.constant 0 : i32
    %c0_i32_0 = arith.constant 0 : i32
    %c0_i32_1 = arith.constant 0 : i32
    return %c0_i32, %c0_i32_0 : i32, i32
  }
  func.func @transform_4(%arg0: i32) -> (i32, i32) {
    %c0_i32 = arith.constant 0 : i32
    %c0_i32_0 = arith.constant 0 : i32
    %c0_i32_1 = arith.constant 0 : i32
    return %c0_i32, %c0_i32_0 : i32, i32
  }
  func.func @transform_5(%arg0: i32) -> (i32, i32) {
    %c0_i32 = arith.constant 0 : i32
    %c0_i32_0 = arith.constant 0 : i32
    %c0_i32_1 = arith.constant 0 : i32
    return %c0_i32, %c0_i32_0 : i32, i32
  }
  func.func @transform_6(%arg0: i32) -> (i32, i32) {
    %c0_i32 = arith.constant 0 : i32
    %c0_i32_0 = arith.constant 0 : i32
    %c0_i32_1 = arith.constant 0 : i32
    return %c0_i32, %c0_i32_0 : i32, i32
  }
  func.func @transform_7(%arg0: i32) -> (i32, i32) {
    %c0_i32 = arith.constant 0 : i32
    %c0_i32_0 = arith.constant 0 : i32
    return %arg0, %c0_i32 : i32, i32
  }
}

</mosaic_0001>

<bundles_post_ra>
// kernel: discriminator_forward.1
= control target key start
LH: loop header
LB: loop body
LE: loop exit
PB: predicated region body
PF: predicated region fallthrough
CT: control target
= control target key end

     0   :  { %v356_v0 = vmov 0.0   ;;  %vm357_vm0 = vmmov 0   ;;  %vm73_vm1 = vcmask 523264   ;;  %vm144_vm2 = vcmask 261120   ;;  %s445_s1 = inlined_call_operand.vmem [shape: bf16[64,32], index: 1, kind: input, shape index: {}]   ;;  %s446_s0 = inlined_call_operand.vmem [shape: bf16[16,64], index: 0, kind: input, shape index: {}]   ;;  %s447_s3 = inlined_call_operand.vmem [shape: bf16[32,32], index: 3, kind: input, shape index: {}]   ;;  %s448_s2 = inlined_call_operand.vmem [shape: f32[1,32], index: 2, kind: input, shape index: {}]   ;;  %s449_s5 = inlined_call_operand.vmem [shape: bf16[32,128], index: 5, kind: input, shape index: {}]   ;;  %s450_s4 = inlined_call_operand.vmem [shape: f32[1,32], index: 4, kind: input, shape index: {}]   ;;  %s451_s6 = inlined_call_operand.vmem [shape: f32[1,128], index: 6, kind: input, shape index: {}]   ;;  %s452_s7 = inlined_call_operand.vmem [shape: f32[16,128], index: 7, kind: output, shape index: {}]  }
   0x1   :  { %309 = vmatprep.subr.bf16.mxu0 %v356_v0  ;;  %v339_v1 = vld [vmem:[%s445_s1] sm:$0xff]   ;;  %317 = vmatprep.mubr.msk.bf16.mxu0 %vm357_vm0, %v356_v0  ;;  %v340_v2 = vld [vmem:[%s445_s1 + $0x8] sm:$0xff]   ;;  %v341_v3 = vld [vmem:[%s445_s1 + $0x10] sm:$0xff]  }
   0x2   :  { %321 = vmatprep.subr.bf16.mxu1 %v356_v0  ;;  %325 = vmatprep.mubr.msk.bf16.mxu1 %vm357_vm0, %v356_v0  ;;  %v342_v4 = vld [vmem:[%s445_s1 + $0x18] sm:$0xff]   ;;  %v343_v5 = vld [vmem:[%s446_s0] sm:$0xff]   ;;  %v345_v7 = vld [vmem:[%s447_s3 + $0x8] sm:$0xff]  }
   0x3   :  { %310 = vmatpush3.bf16.msra.mxu0 %v339_v1  ;;  %v344_v6 = vld [vmem:[%s447_s3] sm:$0xff]   ;;  %v347_v19 = vld [vmem:[%s449_s5 + $0x8] sm:$0xff]  }
   0x4   :  { %311 = vmatprep.subr.bf16.mxu0 %v356_v0  ;;  %322 = vmatpush3.bf16.msra.mxu1 %v344_v6  ;;  %v283_v8 = vld [vmem:[%s448_s2] ss:$0 sm:$0xff] }
   0x5   :  { %323 = vmatprep.subr.bf16.mxu1 %v356_v0  ;;  %v346_v18 = vld [vmem:[%s449_s5] sm:$0xff]  }
   0x6   :  { %v290_v20 = vld [vmem:[%s450_s4] ss:$0 sm:$0xff] }
   0x7   :  { %312 = vmatpush3.bf16.msra.mxu0 %v340_v2  ;;  %v294_v30 = vld [vmem:[%s451_s6] ss:$0 sm:$0xff] }
   0x8   :  { %313 = vmatprep.subr.bf16.mxu0 %v356_v0  ;;  %324 = vmatpush3.bf16.msra.mxu1 %v345_v7 }
   0x9   :  { %329 = vmatprep.subr.bf16.mxu1 %v356_v0 }
   0xb   :  { %314 = vmatpush3.bf16.msra.mxu0 %v341_v3 }
   0xc   :  { %315 = vmatprep.subr.bf16.mxu0 %v356_v0 }
   0xf   :  { %316 = vmatpush3.bf16.msra.mxu0 %v342_v4 }
  0x12   :  { %318 = vmatmul.mubr.msk.bf16.vlgmr.msra.gmra.mrb[0].mxu0 %vm73_vm1, %v343_v5 }
  0xe5   :  { %v111_v9 = vpop.f32.mrb[0].mxu0 }
  0xe6   :  { %v112_v10 = vadd.f32 %v283_v8, %v111_v9  ;;  %v319_v11 = vpop.f32.mrb[1].mxu0 }
  0xe7   :  { %v114_v12 = vpop.f32.mrb[2].mxu0 }
  0xe8   :  { %v115_v13 = vadd.f32 %v283_v8, %v114_v12  ;;  %v320_v14 = vpop.f32.mrb[3].mxu0  ;;  %v118_v15 = vmax.f32 %v112_v10, 0.0 }
  0xea   :  { %v119_v16 = vmax.f32 %v115_v13, 0.0 }
  0xec   :  { %v120_v17 = vpack.c.bf16 %v119_v16, %v118_v15 }
  0xee   :  { %326 = vmatmul.mubr.msk.bf16.vlgmr.msra.gmra.mrb[0].mxu1 %vm144_vm2, %v120_v17 }
  0xef   :  { %333 = vmatprep.mubr.msk.bf16.mxu1 %vm357_vm0, %v356_v0  ;;  %330 = vmatpush3.bf16.msra.mxu1 %v346_v18 }
  0xf0   :  { %331 = vmatprep.subr.bf16.mxu1 %v356_v0 }
  0xf3   :  { %332 = vmatpush3.bf16.msra.mxu1 %v347_v19 }
 0x1c1   :  { %v182_v21 = vpop.f32.mrb[0].mxu1 }
 0x1c2   :  { %v183_v22 = vadd.f32 %v290_v20, %v182_v21  ;;  %v327_v23 = vpop.f32.mrb[1].mxu1 }
 0x1c3   :  { %v185_v24 = vpop.f32.mrb[2].mxu1 }
 0x1c4   :  { %v186_v25 = vadd.f32 %v290_v20, %v185_v24  ;;  %v328_v26 = vpop.f32.mrb[3].mxu1  ;;  %v189_v27 = vmax.f32 %v183_v22, 0.0 }
 0x1c6   :  { %v190_v28 = vmax.f32 %v186_v25, 0.0 }
 0x1c8   :  { %v191_v29 = vpack.c.bf16 %v190_v28, %v189_v27 }
 0x1ca   :  { %334 = vmatmul.mubr.msk.bf16.vlgmr.msra.gmra.mrb[4].mxu1 %vm144_vm2, %v191_v29 }
 0x29d   :  { %v252_v31 = vpop.f32.mrb[4].mxu1 }
 0x29e   :  { %v253_v32 = vadd.f32 %v294_v30, %v252_v31  ;;  %v335_v33 = vpop.f32.mrb[5].mxu1 }
 0x29f   :  { %v255_v34 = vpop.f32.mrb[6].mxu1 }
 0x2a0   :  { %259 = vmax.xlane.f32.xlu0 %v253_v32  ;;  %v336_v35 = vpop.f32.mrb[7].mxu1  ;;  %v256_v36 = vadd.f32 %v294_v30, %v255_v34 }
 0x2a4   :  { %261 = vmax.xlane.f32.xlu0 %v256_v36 }
 0x32d   :  { %v260_v37 = vpop.xlane.xlu0 %259 }
 0x32e   :  { %v263_v38 = vsub.f32 %v253_v32, %v260_v37 }
 0x330   :  { %v265_v39 = vmul.f32 1.442695, %v263_v38 }
 0x331   :  { %v262_v40 = vpop.xlane.xlu0 %261 }
 0x332   :  { %348 = vpow2.f32 %v265_v39  ;;  %v264_v41 = vsub.f32 %v256_v36, %v262_v40 }
 0x334   :  { %v267_v42 = vmul.f32 1.442695, %v264_v41 }
 0x336   :  { %350 = vpow2.f32 %v267_v42 }
 0x33c   :  { %v349_v43 = vpop.eup %348 }
 0x33d   :  { %269 = vadd.xlane.f32.xlu1 %v349_v43 }
 0x340   :  { %v351_v44 = vpop.eup %350 }
 0x341   :  { %271 = vadd.xlane.f32.xlu1 %v351_v44 }
 0x3ca   :  { %v270_v45 = vpop.xlane.xlu1 %269 }
 0x3cb   :  { %352 = vrcp.f32 %v270_v45 }
 0x3ce   :  { %v272_v46 = vpop.xlane.xlu1 %271 }
 0x3cf   :  { %354 = vrcp.f32 %v272_v46 }
 0x3d5   :  { %v353_v47 = vpop.eup %352 }
 0x3d6   :  { %v275_v48 = vmul.f32 %v353_v47, %v349_v43 }
 0x3d8   :  { %277 = vst [vmem:[%s452_s7] sm:$0xff] %v275_v48 }
 0x3d9   :  { %v355_v49 = vpop.eup %354 }
 0x3da   :  { %v276_v50 = vmul.f32 %v355_v49, %v351_v44 }
 0x3dc   :  { %278 = vst [vmem:[%s452_s7 + $0x8] sm:$0xff] %v276_v50 }

</bundles_post_ra>
